<compile_context>
chip_gen: v7x
topology: tpu7x:2x2x1
jax: 0.10.0
libtpu: 0.0.40
codegen_flags: <defaults>
</compile_context>

<pallas_src>
import functools

import jax
import jax.numpy as jnp
from jax.experimental import pallas as pl
from jax.experimental.pallas import tpu as pltpu

IGNORE_LABEL = -1
_LANE = 128


def _round_up(x, m):
    return -(-x // m) * m


def _choose_chunk(c):
    """Columns per inner compute chunk so a few (C, chunk) f32 temporaries fit in vregs."""
    per_col = 4 * 4 * max(c, 8)          # ~4 f32 temporaries of (padded-)C rows
    chunk = 1024
    while chunk > _LANE and chunk * per_col > (192 << 10):
        chunk //= 2
    return chunk


def _ce_kernel(score_ref, target_ref, sum_out_ref, cnt_out_ref,
               sum_acc, cnt_acc, *,
               ignore_label, hw_total, tile_hw, chunk, ragged):
    """Blocks: score (1, C, tile_hw) NCHW-native, target (1, 1, tile_hw) int32."""
    j = pl.program_id(2)

    @pl.when(j == 0)
    def _():
        sum_acc[...] = jnp.zeros_like(sum_acc)
        cnt_acc[...] = jnp.zeros_like(cnt_acc)

    n_classes = score_ref.shape[1]
    n_chunks = tile_hw // chunk

    # Hoisted constants (built once per grid step, reused by every chunk).
    class_iota = jax.lax.broadcasted_iota(jnp.int32, (n_classes, 1), 0)
    lane_iota = jax.lax.broadcasted_iota(jnp.int32, (1, chunk), 1)
    if ragged:
        block_col0 = (pl.program_id(1) * pl.num_programs(2) + j) * tile_hw

    def chunk_body(ci, carry):
        sum_c, cnt_c = carry
        start = ci * chunk
        if not isinstance(start, int):
            start = pl.multiple_of(start, _LANE)

        s = score_ref[0, :, pl.ds(start, chunk)].astype(jnp.float32)   # (C, chunk)
        t = target_ref[0, :, pl.ds(start, chunk)]                      # (1, chunk) int32

        # numerically stable log-sum-exp over the class (sublane) axis
        m = jnp.max(s, axis=0, keepdims=True)                          # (1, chunk)
        lse = m + jnp.log(jnp.sum(jnp.exp(s - m), axis=0, keepdims=True))

        # logit at the target class (ignore_label / out-of-range match no class)
        picked = jnp.sum(jnp.where(class_iota == t, s, 0.0),
                         axis=0, keepdims=True)                        # (1, chunk)

        valid = t != ignore_label                                      # (1, chunk) bool
        if ragged:
            # mask lanes past the real H*W extent on the (single) partial tile
            valid = jnp.logical_and(
                valid, (block_col0 + start) + lane_iota < hw_total)

        # jnp.where (not multiply) so garbage in padded columns cannot leak NaN
        sum_c = sum_c + jnp.where(valid, lse - picked, 0.0)
        cnt_c = cnt_c + valid.astype(jnp.float32)
        return sum_c, cnt_c

    zeros = jnp.zeros((1, chunk), jnp.float32)
    if n_chunks == 1:
        sum_c, cnt_c = chunk_body(0, (zeros, zeros))
    else:
        sum_c, cnt_c = jax.lax.fori_loop(
            0, n_chunks, chunk_body, (zeros, zeros),
            unroll=min(n_chunks, 8))

    # lane-dense accumulation; cross-lane reduce deferred to the last step
    sum_acc[...] += sum_c
    cnt_acc[...] += cnt_c

    @pl.when(j == pl.num_programs(2) - 1)
    def _():
        total = jnp.sum(sum_acc[...])
        count = jnp.sum(cnt_acc[...])
        sum_out_ref[...] = jnp.broadcast_to(total, sum_out_ref.shape).astype(jnp.float32)
        cnt_out_ref[...] = jnp.broadcast_to(count, cnt_out_ref.shape).astype(jnp.float32)


def cross_entropy_pallas(score, target, ignore_label=IGNORE_LABEL,
                         max_block_bytes=None):
    """score: (N, C, H, W) float, target: (N, H, W) int.  Mean CE over valid pixels."""
    N, C, H, W = score.shape
    HW = H * W

    # NCHW read directly: reshapes are free (no transpose, no padding copy).
    logits = score.reshape(N, C, HW)
    tgt = target.reshape(N, 1, HW).astype(jnp.int32)

    itemsize = jnp.dtype(score.dtype).itemsize
    sub = max(8, 32 // itemsize)                       # sublane packing for dtype
    c_pad = _round_up(C, sub)

    # Generation-aware VMEM budget (v5e/v6e: 128 MiB, v7x: 64 MiB per TC).
    try:
        vmem_cap = int(getattr(pltpu.get_tpu_info(), "vmem_capacity_bytes", 64 << 20))
    except Exception:  # pragma: no cover - conservative fallback
        vmem_cap = 64 << 20
    if max_block_bytes is None:
        max_block_bytes = (vmem_cap * 7) // 16         # ~28 MiB v7x, ~56 MiB v5e/v6e

    chunk = _choose_chunk(C)

    # VMEM bytes per pixel column: double-buffered logits block +
    # double-buffered sublane-padded int32 target block.
    blk_bytes_per_col = 2 * c_pad * itemsize + 2 * 8 * 4
    hbm_bytes_per_col = C * itemsize + 4               # actual HBM traffic / column

    max_cols = max(_LANE, (max_block_bytes // blk_bytes_per_col) // _LANE * _LANE)
    tile_hw = min(max_cols, _round_up(HW, _LANE))      # always a multiple of 128
    if tile_hw >= chunk:
        tile_hw = (tile_hw // chunk) * chunk           # tile is a multiple of chunk
    else:
        chunk = tile_hw
    nb = -(-HW // tile_hw)

    # Give the 2-deep pipeline a steady state (>=4 steps) while keeping
    # per-step HBM traffic >= ~1 MiB so the ~0.35 us/step overhead stays small.
    while (N * nb < 4 and tile_hw > chunk
           and (tile_hw // 2) * hbm_bytes_per_col >= (1 << 20)):
        tile_hw = max(chunk, ((tile_hw // 2) // chunk) * chunk)
        nb = -(-HW // tile_hw)

    # v7x: split the pixel axis across both TensorCores when N alone can't
    # balance them (N==1 or odd).  Harmless on single-TC chips.
    part = 2 if (N % 2 == 1 and nb % 2 == 0 and nb >= 2) else 1
    g = nb // part
    ragged = (HW % tile_hw) != 0

    need = tile_hw * blk_bytes_per_col + 4 * chunk * 4 + (4 << 20)
    vmem_limit = int(min(max(need, 16 << 20), (vmem_cap * 3) // 4))

    kernel = functools.partial(
        _ce_kernel, ignore_label=ignore_label, hw_total=HW,
        tile_hw=tile_hw, chunk=chunk, ragged=ragged)

    sums, cnts = pl.pallas_call(
        kernel,
        out_shape=(
            jax.ShapeDtypeStruct((N * part, 1, _LANE), jnp.float32),
            jax.ShapeDtypeStruct((N * part, 1, _LANE), jnp.float32),
        ),
        grid_spec=pltpu.PrefetchScalarGridSpec(
            num_scalar_prefetch=0,
            grid=(N, part, g),
            in_specs=[
                pl.BlockSpec((1, C, tile_hw), lambda n, p, j, g=g: (n, 0, p * g + j)),
                pl.BlockSpec((1, 1, tile_hw), lambda n, p, j, g=g: (n, 0, p * g + j)),
            ],
            out_specs=[
                pl.BlockSpec((1, 1, _LANE), lambda n, p, j, part=part: (n * part + p, 0, 0)),
                pl.BlockSpec((1, 1, _LANE), lambda n, p, j, part=part: (n * part + p, 0, 0)),
            ],
            scratch_shapes=[
                pltpu.VMEM((1, chunk), jnp.float32),   # running per-column NLL
                pltpu.VMEM((1, chunk), jnp.float32),   # running per-column valid count
            ],
        ),
        compiler_params=pltpu.CompilerParams(
            dimension_semantics=("parallel", "parallel", "arbitrary"),
            vmem_limit_bytes=vmem_limit,
        ),
    )(logits, tgt)

    # Per-(image, partition) partials -> global mean (matches reduction='mean'
    # with ignore_index; NaN if every pixel is ignored, same as PyTorch).
    return jnp.sum(sums[:, 0, 0]) / jnp.sum(cnts[:, 0, 0])


def cross_entropy_ref(score, target, ignore_label=IGNORE_LABEL):
    N, C, H, W = score.shape
    logits = jnp.transpose(score, (0, 2, 3, 1)).reshape(-1, C).astype(jnp.float32)
    tgt = target.reshape(-1)
    lse = jax.nn.logsumexp(logits, axis=-1)
    picked = jnp.take_along_axis(
        logits, jnp.clip(tgt, 0, C - 1)[:, None], axis=-1)[:, 0]
    valid = (tgt != ignore_label).astype(jnp.float32)
    return jnp.sum((lse - picked) * valid) / jnp.sum(valid)


if __name__ == "__main__":
    key = jax.random.PRNGKey(0)
    k1, k2 = jax.random.split(key)

    N, C, H, W = 2, 4, 16, 16
    score = jax.random.normal(k1, (N, C, H, W), dtype=jnp.float32)
    # labels in [0, C) with some ignored (-1) positions
    target = jax.random.randint(k2, (N, H, W), minval=-1, maxval=C)

    loss = cross_entropy_pallas(score, target)
    loss = jax.block_until_ready(loss)

    ref = cross_entropy_ref(score, target)
    assert jnp.allclose(loss, ref, rtol=1e-5, atol=1e-5), (loss, ref)

    print("KERNEL_OK")
</pallas_src>

<mosaic_0001>
module attributes {stable_mosaic.version = 11 : i64} {
  func.func @_ce_kernel(%arg0: i32, %arg1: i32, %arg2: i32, %arg3: memref<1x4x256xf32, #tpu.memory_space<vmem>>, %arg4: memref<1x1x256xi32, #tpu.memory_space<vmem>>, %arg5: memref<1x1x128xf32, #tpu.memory_space<vmem>>, %arg6: memref<1x1x128xf32, #tpu.memory_space<vmem>>, %arg7: memref<1x256xf32, #tpu.memory_space<vmem>>, %arg8: memref<1x256xf32, #tpu.memory_space<vmem>>) attributes {dimension_semantics = [#tpu.dimension_semantics<parallel>, #tpu.dimension_semantics<parallel>, #tpu.dimension_semantics<arbitrary>], iteration_bounds = array<i64: 2, 1, 1>, scalar_prefetch = 0 : i64, scratch_operands = 2 : i64, tpu.core_type = #tpu.core_type<tc>, window_params = [{transform_indices = @transform_0, window_bounds = array<i64: 1, 4, 256>}, {transform_indices = @transform_1, window_bounds = array<i64: 1, 1, 256>}, {transform_indices = @transform_2, window_bounds = array<i64: 1, 1, 128>}, {transform_indices = @transform_3, window_bounds = array<i64: 1, 1, 128>}]} {
    %c0_i32 = arith.constant 0 : i32
    %0 = arith.cmpi eq, %arg2, %c0_i32 : i32
    %1 = arith.extui %0 : i1 to i32
    %c0_i32_0 = arith.constant 0 : i32
    %2 = arith.cmpi ne, %1, %c0_i32_0 : i32
    scf.if %2 {
      %cst_21 = arith.constant 0.000000e+00 : f32
      %43 = vector.broadcast %cst_21 : f32 to vector<1x256xf32>
      %c0_22 = arith.constant 0 : index
      %c0_23 = arith.constant 0 : index
      %44 = vector.load %arg7[%c0_22, %c0_23] : memref<1x256xf32, #tpu.memory_space<vmem>>, vector<1x256xf32>
      tpu.vector_store %arg7[%c0_22, %c0_23], %43 {strides = array<i32>} : memref<1x256xf32, #tpu.memory_space<vmem>>, vector<1x256xf32>,
      %cst_24 = arith.constant 0.000000e+00 : f32
      %45 = vector.broadcast %cst_24 : f32 to vector<1x256xf32>
      %c0_25 = arith.constant 0 : index
      %c0_26 = arith.constant 0 : index
      %46 = vector.load %arg8[%c0_25, %c0_26] : memref<1x256xf32, #tpu.memory_space<vmem>>, vector<1x256xf32>
      tpu.vector_store %arg8[%c0_25, %c0_26], %45 {strides = array<i32>} : memref<1x256xf32, #tpu.memory_space<vmem>>, vector<1x256xf32>,
    } else {
    }
    %3 = tpu.iota {dimensions = array<i32: 0>} : vector<4x1xi32>
    %cst = arith.constant 0.000000e+00 : f32
    %4 = vector.broadcast %cst : f32 to vector<1x256xf32>
    %c0 = arith.constant 0 : index
    %c0_1 = arith.constant 0 : index
    %c0_2 = arith.constant 0 : index
    %5 = vector.load %arg3[%c0, %c0_1, %c0_2] : memref<1x4x256xf32, #tpu.memory_space<vmem>>, vector<1x4x256xf32>
    %6 = vector.shape_cast %5 : vector<1x4x256xf32> to vector<4x256xf32>
    %c0_3 = arith.constant 0 : index
    %c0_4 = arith.constant 0 : index
    %c0_5 = arith.constant 0 : index
    %7 = vector.load %arg4[%c0_3, %c0_4, %c0_5] : memref<1x1x256xi32, #tpu.memory_space<vmem>>, vector<1x1x256xi32>
    %8 = vector.shape_cast %7 : vector<1x1x256xi32> to vector<1x256xi32>
    %cst_6 = arith.constant dense<0xFF800000> : vector<256xf32>
    %9 = vector.multi_reduction <maximumf>, %6, %cst_6 [0] : vector<4x256xf32> to vector<256xf32>
    %10 = vector.shape_cast %9 : vector<256xf32> to vector<1x256xf32>
    %11 = vector.broadcast %10 : vector<1x256xf32> to vector<4x256xf32>
    %12 = arith.subf %6, %11 : vector<4x256xf32>
    %13 = math.exp %12 : vector<4x256xf32>
    %cst_7 = arith.constant dense<0.000000e+00> : vector<256xf32>
    %14 = vector.multi_reduction <add>, %13, %cst_7 [0] : vector<4x256xf32> to vector<256xf32>
    %15 = vector.shape_cast %14 : vector<256xf32> to vector<1x256xf32>
    %16 = math.log %15 : vector<1x256xf32>
    %17 = arith.addf %10, %16 : vector<1x256xf32>
    %18 = vector.broadcast %3 : vector<4x1xi32> to vector<4x256xi32>
    %19 = vector.broadcast %8 : vector<1x256xi32> to vector<4x256xi32>
    %20 = arith.cmpi eq, %18, %19 : vector<4x256xi32>
    %cst_8 = arith.constant 0.000000e+00 : f32
    %21 = vector.broadcast %cst_8 : f32 to vector<4x256xf32>
    %22 = arith.select %20, %6, %21 : vector<4x256xi1>, vector<4x256xf32>
    %cst_9 = arith.constant dense<0.000000e+00> : vector<256xf32>
    %23 = vector.multi_reduction <add>, %22, %cst_9 [0] : vector<4x256xf32> to vector<256xf32>
    %24 = vector.shape_cast %23 : vector<256xf32> to vector<1x256xf32>
    %c-1_i32 = arith.constant -1 : i32
    %25 = vector.broadcast %c-1_i32 : i32 to vector<1x256xi32>
    %26 = arith.cmpi ne, %8, %25 : vector<1x256xi32>
    %27 = arith.subf %17, %24 : vector<1x256xf32>
    %cst_10 = arith.constant 0.000000e+00 : f32
    %28 = vector.broadcast %cst_10 : f32 to vector<1x256xf32>
    %29 = arith.select %26, %27, %28 : vector<1x256xi1>, vector<1x256xf32>
    %30 = arith.addf %4, %29 : vector<1x256xf32>
    %31 = arith.extui %26 : vector<1x256xi1> to vector<1x256xi32>
    %32 = arith.sitofp %31 : vector<1x256xi32> to vector<1x256xf32>
    %33 = arith.addf %4, %32 : vector<1x256xf32>
    %c0_11 = arith.constant 0 : index
    %c0_12 = arith.constant 0 : index
    %34 = vector.load %arg7[%c0_11, %c0_12] : memref<1x256xf32, #tpu.memory_space<vmem>>, vector<1x256xf32>
    %35 = arith.addf %34, %30 : vector<1x256xf32>
    %c0_13 = arith.constant 0 : index
    %c0_14 = arith.constant 0 : index
    %36 = vector.load %arg7[%c0_13, %c0_14] : memref<1x256xf32, #tpu.memory_space<vmem>>, vector<1x256xf32>
    tpu.vector_store %arg7[%c0_13, %c0_14], %35 {strides = array<i32>} : memref<1x256xf32, #tpu.memory_space<vmem>>, vector<1x256xf32>,
    %c0_15 = arith.constant 0 : index
    %c0_16 = arith.constant 0 : index
    %37 = vector.load %arg8[%c0_15, %c0_16] : memref<1x256xf32, #tpu.memory_space<vmem>>, vector<1x256xf32>
    %38 = arith.addf %37, %33 : vector<1x256xf32>
    %c0_17 = arith.constant 0 : index
    %c0_18 = arith.constant 0 : index
    %39 = vector.load %arg8[%c0_17, %c0_18] : memref<1x256xf32, #tpu.memory_space<vmem>>, vector<1x256xf32>
    tpu.vector_store %arg8[%c0_17, %c0_18], %38 {strides = array<i32>} : memref<1x256xf32, #tpu.memory_space<vmem>>, vector<1x256xf32>,
    %c0_i32_19 = arith.constant 0 : i32
    %40 = arith.cmpi eq, %arg2, %c0_i32_19 : i32
    %41 = arith.extui %40 : i1 to i32
    %c0_i32_20 = arith.constant 0 : i32
    %42 = arith.cmpi ne, %41, %c0_i32_20 : i32
    scf.if %42 {
      %c0_21 = arith.constant 0 : index
      %c0_22 = arith.constant 0 : index
      %43 = vector.load %arg7[%c0_21, %c0_22] : memref<1x256xf32, #tpu.memory_space<vmem>>, vector<1x256xf32>
      %44 = vector.shape_cast %43 : vector<1x256xf32> to vector<1x1x256xf32>
      %cst_23 = arith.constant dense<0.000000e+00> : vector<1xf32>
      %45 = vector.multi_reduction <add>, %44, %cst_23 [1, 2] : vector<1x1x256xf32> to vector<1xf32>
      %46 = vector.shape_cast %45 : vector<1xf32> to vector<1x1x1xf32>
      %47 = vector.extract %46[0, 0, 0] : f32 from vector<1x1x1xf32>
      %c0_24 = arith.constant 0 : index
      %c0_25 = arith.constant 0 : index
      %48 = vector.load %arg8[%c0_24, %c0_25] : memref<1x256xf32, #tpu.memory_space<vmem>>, vector<1x256xf32>
      %49 = vector.shape_cast %48 : vector<1x256xf32> to vector<1x1x256xf32>
      %cst_26 = arith.constant dense<0.000000e+00> : vector<1xf32>
      %50 = vector.multi_reduction <add>, %49, %cst_26 [1, 2] : vector<1x1x256xf32> to vector<1xf32>
      %51 = vector.shape_cast %50 : vector<1xf32> to vector<1x1x1xf32>
      %52 = vector.extract %51[0, 0, 0] : f32 from vector<1x1x1xf32>
      %53 = vector.broadcast %47 : f32 to vector<1x1x128xf32>
      %c0_27 = arith.constant 0 : index
      %c0_28 = arith.constant 0 : index
      %c0_29 = arith.constant 0 : index
      %54 = vector.load %arg5[%c0_27, %c0_28, %c0_29] : memref<1x1x128xf32, #tpu.memory_space<vmem>>, vector<1x1x128xf32>
      tpu.vector_store %arg5[%c0_27, %c0_28, %c0_29], %53 {strides = array<i32>} : memref<1x1x128xf32, #tpu.memory_space<vmem>>, vector<1x1x128xf32>,
      %55 = vector.broadcast %52 : f32 to vector<1x1x128xf32>
      %c0_30 = arith.constant 0 : index
      %c0_31 = arith.constant 0 : index
      %c0_32 = arith.constant 0 : index
      %56 = vector.load %arg6[%c0_30, %c0_31, %c0_32] : memref<1x1x128xf32, #tpu.memory_space<vmem>>, vector<1x1x128xf32>
      tpu.vector_store %arg6[%c0_30, %c0_31, %c0_32], %55 {strides = array<i32>} : memref<1x1x128xf32, #tpu.memory_space<vmem>>, vector<1x1x128xf32>,
    } else {
    }
    return
  }
  func.func @transform_0(%arg0: i32, %arg1: i32, %arg2: i32) -> (i32, i32, i32) {
    %c1_i32 = arith.constant 1 : i32
    %0 = arith.muli %arg1, %c1_i32 : i32
    %1 = arith.addi %0, %arg2 : i32
    %c0_i32 = arith.constant 0 : i32
    %c0_i32_0 = arith.constant 0 : i32
    return %arg0, %c0_i32, %1 : i32, i32, i32
  }
  func.func @transform_1(%arg0: i32, %arg1: i32, %arg2: i32) -> (i32, i32, i32) {
    %c1_i32 = arith.constant 1 : i32
    %0 = arith.muli %arg1, %c1_i32 : i32
    %1 = arith.addi %0, %arg2 : i32
    %c0_i32 = arith.constant 0 : i32
    %c0_i32_0 = arith.constant 0 : i32
    return %arg0, %c0_i32, %1 : i32, i32, i32
  }
  func.func @transform_2(%arg0: i32, %arg1: i32, %arg2: i32) -> (i32, i32, i32) {
    %c1_i32 = arith.constant 1 : i32
    %0 = arith.muli %arg0, %c1_i32 : i32
    %1 = arith.addi %0, %arg1 : i32
    %c0_i32 = arith.constant 0 : i32
    %c0_i32_0 = arith.constant 0 : i32
    %c0_i32_1 = arith.constant 0 : i32
    return %1, %c0_i32, %c0_i32_0 : i32, i32, i32
  }
  func.func @transform_3(%arg0: i32, %arg1: i32, %arg2: i32) -> (i32, i32, i32) {
    %c1_i32 = arith.constant 1 : i32
    %0 = arith.muli %arg0, %c1_i32 : i32
    %1 = arith.addi %0, %arg1 : i32
    %c0_i32 = arith.constant 0 : i32
    %c0_i32_0 = arith.constant 0 : i32
    %c0_i32_1 = arith.constant 0 : i32
    return %1, %c0_i32, %c0_i32_0 : i32, i32, i32
  }
}

</mosaic_0001>

<bundles_post_ra>
// kernel: tpu_custom_call.1
= control target key start
LH: loop header
LB: loop body
LE: loop exit
PB: predicated region body
PF: predicated region fallthrough
CT: control target
= control target key end

     0   :  { %9 = vsyncpa [#allocation5], 0  ;;  %s1229_s0 = inlined_call_operand.hbm [shape: f32[2,4,256], index: 0, kind: input, shape index: {}]   ;;  %s1230_s1 = inlined_call_operand.hbm [shape: s32[2,1,256], index: 1, kind: input, shape index: {}]   ;;  %s1231_s2 = inlined_call_operand.hbm [shape: f32[2,1,128], index: 2, kind: output, shape index: {0}]   ;;  %s1232_s3 = inlined_call_operand.hbm [shape: f32[2,1,128], index: 3, kind: output, shape index: {1}]  }
   0x1   :  { %11 = vsyncpa [#allocation5 + $0x1], 0 }
   0x2   :  { %12 = vsyncpa [#allocation8], 0 }
   0x3   :  { %14 = vsyncpa [#allocation8 + $0x1], 0 }
   0x4   :  { %15 = vsyncpa [#allocation6], 0 }
   0x5   :  { %17 = vsyncpa [#allocation6 + $0x1], 0 }
   0x6   :  { %18 = vsyncpa [#allocation11], 0 }
   0x7   :  { %20 = vsyncpa [#allocation11 + $0x1], 0  ;;  %s938_s12 = smov 0   ;;  %s940_s13 = smov 0  }
   0x8   :  { %s942_s14 = smov 0   ;;  %s944_s15 = smov 0  }
   0x9   :  { %s946_s16 = smov 0   ;;  %s948_s17 = smov 0  }
   0xa LB: > { %s627_s18 = sadd.s32 4294967295, %s910_s17   ;;  %s628_s19 = sadd.s32 4294967294, %s910_s17   ;;  %s910_s17 = sphi %s948_s17, %s26_s17   ;;  %s906_s16 = sphi %s946_s16, %s1254_s16   ;;  %s902_s15 = sphi %s944_s15, %s1253_s15   ;;  %s898_s14 = sphi %s942_s14, %s1252_s14   ;;  %s894_s13 = sphi %s940_s13, %s1251_s13   ;;  %s890_s12 = sphi %s938_s12, %s1250_s12  }
   0xb   : > { %s45_s20 = sadd.s32 1, %s906_s16  ;;  %s56_s21 = sadd.s32 1, %s898_s14 }
   0xc   : > { %p47_p0 = scmp.ge.s32.totalorder %s45_s20, 2  ;;  %p63_p1 = scmp.ne.s32.totalorder %s898_s14, %s894_s13 }
   0xd   : > { %p64_p2 = scmp.eq.s32.totalorder %s910_s17, 0  ;;  %p69_p3 = scmp.ne.s32.totalorder %s894_s13, %s890_s12 }
   0xe   : > { %s1256_s20 = smov (%p47_p0, %s45_s20), 0  ;;  %p70_p5 = scmp.eq.s32.totalorder %s627_s18, 0 }
   0xf   : > { %p979_p4 = por %p64_p2, %p63_p1  ;;  %s51_s23 = ssub.s32 %s906_s16, %s1256_s20 }
  0x10   : > { %p125_p6 = scmp.eq.s32.totalorder %s627_s18, 1  ;;  %p54_p7 = scmp.eq.s32.totalorder %s51_s23, 0 }
  0x11   : > { %p985_p8 = por %p70_p5, %p69_p3  ;;  %p131_p10 = scmp.eq.s32.totalorder %s628_s19, 1 }
  0x12   : > { %p989_p9 = por %p125_p6, %p63_p1  ;;  %p673_p13 = scmp.lt.s32.totalorder %s910_s17, 2 }
  0x13   : > { %s1236_s24 = scalar_select %p985_p8, 1, 0 }
  0x14   : > { %s1237_s25 = scalar_select %p989_p9, 1, 0 }
  0x15   : > { %s994_s26 = scalar_select %p54_p7, %s898_s14, %s56_s21  }
  0x16   : > { %p996_p11 = por %p131_p10, %p69_p3  ;;  %s1003_s28 = sand.u32 1, %s898_s14  }
  0x17   : > { %s631_s29 = sshll.u32 %s1003_s28, 3  ;;  %s645_s30 = sshll.u32 %s906_s16, 7 }
  0x18   : > { %s1238_s27 = scalar_select %p996_p11, 1, 0 }
  0x19   : > { %s1010_s6 = scalar_lea.hbm %s1229_s0, %s645_s30  ;;  %s183_s7 = scalar_lea.vmem [#allocation4], %s631_s29 }
  0x1a   : > { %s194_s8 = sshll.u32 %s183_s7, 4  ;;  %p1016_p0 = pnand %p673_p13, %p979_p4  ;;  %s1012_s8 = int_to_ptr.vmem [resolvable:$true] %s194_s8 }
  0x1b   : > { %s180_s10 = scalar_lea.sflag [#allocation5], %s1003_s28  ;;  %s732_s11 = scalar_lea.hbm %s1010_s6, 128 }
  0x1c   : > { %p733_p3 = scmp.ne.s32.totalorder %s1010_s6, %s732_s11  ;;  %p734_p5 = pneg %p1016_p0 }
  0x1d   : > { %s737_s21 = scalar_lea.hbm %s1229_s0, 256  ;;  %p738_p4 = scmp.lt.u32.totalorder %s1010_s6, %s1229_s0 }
  0x1e   : > { %p735_p6 = pnand %p734_p5, %p733_p3  ;;  %p739_p10 = scmp.lt.u32.totalorder %s737_s21, %s732_s11 }
  0x1f   : > { %p741_p12 = scmp.lt.u32.totalorder %s732_s11, %s1010_s6 }
  0x20   : > { %p736_p7 = pneg %p735_p6  ;;  %p740_p13 = por %p739_p10, %p738_p4 }
  0x22   : > { %p742_p1 = por %p741_p12, %p740_p13 }
  0x24   : > { %p743_p2 = pnand %p742_p1, %p736_p7 }
  0x26   : > { %746 = shalt.err (!%p743_p2)
}
  0x27   : > { %s747_s29 = scalar_lea.vmem %s1012_s8, 128  ;;  %s912_s30 = smov [#allocation4]  }
  0x28   : > { %p748_p3 = scmp.ne.s32.totalorder %s1012_s8, %s747_s29  ;;  %s752_s4 = sshll.u32 %s912_s30, 4  ;;  %s753_s4 = int_to_ptr.vmem [resolvable:$false] %s752_s4 }
  0x29   : > { %s754_s5 = scalar_lea.vmem %s753_s4, 256  ;;  %p755_p9 = scmp.lt.s32.totalorder %s1012_s8, %s753_s4 }
  0x2a   : > { %p750_p6 = pnand %p748_p3, %p734_p5  ;;  %p756_p4 = scmp.lt.s32.totalorder %s754_s5, %s747_s29 }
  0x2c   : > { %p751_p11 = pneg %p750_p6  ;;  %p757_p10 = por %p756_p4, %p755_p9 }
  0x2e   : > { %p758_p12 = pnand %p757_p10, %p751_p11 }
  0x30   : > { %761 = shalt.err (!%p758_p12)
}
  0x31   : > { %662 = dma.hbm_to_vmem [thread:$0]  (!%p1016_p0), %s1010_s6, 128, %s1012_s8, %s180_s10  }
  0x32   : > { %p1240_p1 = scmp.lt.s32.totalorder %s910_s17, 3  ;;  %p1241_p2 = scmp.ge.s32.totalorder %s910_s17, 1 }
  0x33   : > { %s634_s11 = sshll.u32 %s1003_s28, 1  ;;  %s646_s18 = sshll.u32 %s906_s16, 5 }
  0x34   : > { %p1052_p7 = pnand %p1241_p2, %p1240_p1  ;;  %s1061_s22 = scalar_lea.hbm %s1230_s1, %s646_s18 }
  0x35   : > { %s205_s23 = scalar_lea.vmem [#allocation7], %s634_s11  ;;  %s202_s6 = scalar_lea.sflag [#allocation8], %s1003_s28 }
  0x36   : > { %s1242_s7 = scalar_select %p1052_p7, 1, 0 }
  0x37   : > { %s216_s29 = sshll.u32 %s205_s23, 4  ;;  %s762_s8 = scalar_lea.hbm %s1061_s22, 32  ;;  %s217_s29 = int_to_ptr.vmem [resolvable:$true] %s216_s29 }
  0x38   : > { %p763_p9 = scmp.ne.s32.totalorder %s1061_s22, %s762_s8  ;;  %s767_s4 = scalar_lea.hbm %s1230_s1, 64 }
  0x39   : > { %p768_p3 = scmp.lt.u32.totalorder %s1061_s22, %s1230_s1  ;;  %p769_p6 = scmp.lt.u32.totalorder %s767_s4, %s762_s8 }
  0x3a   : > { %p765_p11 = pnand %p763_p9, %p734_p5  ;;  %p771_p10 = scmp.lt.u32.totalorder %s762_s8, %s1061_s22 }
  0x3b   : > { %p770_p4 = por %p769_p6, %p768_p3 }
  0x3c   : > { %p766_p13 = pneg %p765_p11 }
  0x3d   : > { %p772_p12 = por %p771_p10, %p770_p4 }
  0x3f   : > { %p773_p1 = pnand %p772_p12, %p766_p13 }
  0x41   : > { %776 = shalt.err (!%p773_p1)
}
  0x42   : > { %s777_s28 = scalar_lea.vmem %s217_s29, 32  ;;  %s913_s11 = smov [#allocation7]  }
  0x43   : > { %p778_p2 = scmp.ne.s32.totalorder %s217_s29, %s777_s28  ;;  %s782_s19 = sshll.u32 %s913_s11, 4  ;;  %s783_s19 = int_to_ptr.vmem [resolvable:$false] %s782_s19 }
  0x44   : > { %s784_s21 = scalar_lea.vmem %s783_s19, 64  ;;  %p785_p8 = scmp.lt.s32.totalorder %s217_s29, %s783_s19 }
  0x45   : > { %p780_p9 = pnand %p778_p2, %p734_p5  ;;  %p786_p7 = scmp.lt.s32.totalorder %s784_s21, %s777_s28 }
  0x47   : > { %p781_p11 = pneg %p780_p9  ;;  %p787_p3 = por %p786_p7, %p785_p8 }
  0x49   : > { %p788_p6 = pnand %p787_p3, %p781_p11 }
  0x4b   : > { %791 = shalt.err (!%p788_p6)
}
  0x4c   : > { %665 = dma.hbm_to_vmem [thread:$0]  (!%p1016_p0), %s1061_s22, 32, %s217_s29, %s202_s6  }
  0x4d   : > { %p1243_p13 = scmp.ne.s32.totalorder %s1242_s7, 0 }
  0x4e   : > { %s1086_s23 = sand.u32 (!%p1243_p13), 1, %s894_s13   ;;  %p1244_p5 = scmp.ne.s32.totalorder (!%p1243_p13), %s1236_s24, 0 }
  0x4f   : > { %225 = sbr.rel (%p1243_p13) target bundleno = 420 (0x1a4), region = 28  ;;  %s638_s8 = sshll.u32 (!%p1243_p13), %s1086_s23, 3 }
  0x50   : > { %s228_s10 = scalar_lea.sflag (!%p1243_p13), [#allocation5], %s1086_s23  ;;  %s231_s30 = scalar_lea.vmem (!%p1243_p13), [#allocation4], %s638_s8 }
  0x56   : > { %873 = dma.done.wait (%p1244_p5), %s228_s10, 128  }
  0x57   : > { %875 = vsyncadd (%p1244_p5), %s228_s10, 4294967168  ;;  %s639_s9 = sshll.u32 %s1086_s23, 1  ;;  %s237_s7 = scalar_lea.sflag [#allocation8], %s1086_s23 }
  0x58   : > { %s240_s22 = scalar_lea.vmem [#allocation7], %s639_s9 }
  0x59   : > { %877 = dma.done.wait (%p1244_p5), %s237_s7, 32  }
  0x5a   : > { %879 = vsyncadd (%p1244_p5), %s237_s7, 4294967264  ;;  %v281_v0 = vlaneseq  ;;  %v914_v2 = vmov 0.0   ;;  %vm294_vm1 = vcmask 1043456   ;;  %v289_v3 = vld [vmem:[%s231_s30] sm:$0xff]  ;;  %v1108_v4 = vld [vmem:[%s240_s22] sm:$0x3] }
  0x5b   : > { %v292_v5 = vcombine.high %v289_v3, %v289_v3  ;;  %v295_v6 = vsel %vm294_vm1, %v289_v3, -inf  ;;  %vm365_vm2 = vcmp.ne.s32.totalorder %v1108_v4, 4294967295  ;;  %v915_v61 = vmov 1966171168   ;;  %s641_s24 = sshll.u32 %s902_s15, 4  ;;  %s264_s29 = scalar_lea.vmem [#allocation9], %s1086_s23 }
  0x5c   : > { %vm1100_vm0 = vcmp.lt.s32.totalorder %v281_v0, 256  ;;  %v296_v7 = vrot.slane %v295_v6, 4  ;;  %v640_v9 = vsel %vm365_vm2, 1.0, %v914_v2  ;;  %v288_v23 = vshrl.u32 %v281_v0, 7  ;;  %s475_s6 = sshll.u32 %s264_s29, 4  ;;  %s270_s4 = scalar_lea.vmem [#allocation10], %s1086_s23  ;;  %s1149_s6 = int_to_ptr.vmem [resolvable:$true] %s475_s6 }
  0x5d   : > { %285 = vst.msk [vmem:[#allocation2] sm:$0x3] %vm1100_vm0, %v914_v2  ;;  %286 = vst.msk [vmem:[#allocation3] sm:$0x3] %vm1100_vm0, %v914_v2  ;;  %v302_v8 = vsel %vm294_vm1, %v292_v5, -inf  ;;  %v372_v62 = vunpack.c.l.s4 %v915_v61  ;;  %vm416_vm5 = vcmask 1040384   ;;  %s1147_s11 = scalar_lea.hbm %s1231_s2, %s641_s24 }
  0x5e   : > { %v297_v11 = vmax.f32 %v295_v6, %v296_v7  ;;  %v303_v12 = vrot.slane %v302_v8, 4  ;;  %v1117_v27 = vsub.s32 0, %v288_v23  ;;  %v1119_v28 = vsub.s32 1, %v288_v23  ;;  %s489_s5 = sshll.u32 %s270_s4, 4  ;;  %s458_s21 = scalar_lea.sflag [#allocation6], %s1086_s23  ;;  %s1151_s5 = int_to_ptr.vmem [resolvable:$true] %s489_s5 }
  0x5f   : > { %s792_s8 = scalar_lea.vmem %s1149_s6, 16  ;;  %p1247_p0 = scmp.ne.s32.totalorder %s1237_s25, 0 }
  0x60   : > { %v298_v14 = vrot.slane %v297_v11, 2  ;;  %v304_v15 = vmax.f32 %v302_v8, %v303_v12  ;;  %v342_v29 = vrot.slane %v1108_v4, %v1117_v27  ;;  %v346_v30 = vrot.slane %v1108_v4, %v1119_v28  ;;  %p793_p8 = scmp.ne.s32.totalorder %s1149_s6, %s792_s8  ;;  %s916_s10 = smov [#allocation9]  }
  0x61   : > { %v373_v8 = vunpack.c.0.s8 %v372_v62  ;;  %s796_s30 = sshll.u32 %s916_s10, 4  ;;  %s797_s30 = int_to_ptr.vmem [resolvable:$false] %s796_s30 }
  0x62   : > { %v299_v16 = vmax.f32 %v297_v11, %v298_v14  ;;  %v305_v17 = vrot.slane %v304_v15, 2  ;;  %vm347_vm3 = vcmp.eq.s32.totalorder %v288_v23, %v342_v29  ;;  %vm348_vm4 = vcmp.eq.s32.totalorder %v288_v23, %v346_v30  ;;  %p794_p7 = pnand %p793_p8, %p1247_p0  ;;  %s798_s9 = scalar_lea.vmem %s797_s30, 32 }
  0x63   : > { %v349_v31 = vsel %vm347_vm3, %v289_v3, 0.0  ;;  %v350_v35 = vsel %vm348_vm4, %v292_v5, 0.0  ;;  %v376_v12 = vsub.s32 %v373_v8, %v288_v23  ;;  %p799_p10 = scmp.lt.s32.totalorder %s1149_s6, %s797_s30  ;;  %p800_p12 = scmp.lt.s32.totalorder %s798_s9, %s792_s8 }
  0x64   : > { %v398_v10 = vld [vmem:[#allocation3] sm:$0x3]  ;;  %v300_v18 = vrot.slane %v299_v16, 1  ;;  %v306_v19 = vmax.f32 %v304_v15, %v305_v17  ;;  %v351_v37 = vsel %vm294_vm1, %v349_v31, 0.0  ;;  %v358_v41 = vsel %vm294_vm1, %v350_v35, 0.0  ;;  %p795_p4 = pneg %p794_p7 }
  0x65   : > { %v399_v13 = vadd.f32 %v640_v9, %v398_v10  ;;  %v352_v42 = vrot.slane %v351_v37, 4  ;;  %v359_v45 = vrot.slane %v358_v41, 4  ;;  %p801_p1 = por %p800_p12, %p799_p10 }
  0x66   : > { %v301_v20 = vmax.f32 %v299_v16, %v300_v18  ;;  %v307_v21 = vrot.slane %v306_v19, 1  ;;  %v391_v16 = vld [vmem:[#allocation2] sm:$0x3] }
  0x67   : > { %400 = vst.msk [vmem:[#allocation3] sm:$0x3] %vm1100_vm0, %v399_v13  ;;  %v353_v48 = vadd.f32 %v352_v42, %v351_v37  ;;  %v360_v51 = vadd.f32 %v359_v45, %v358_v41  ;;  %p802_p2 = pnand %p801_p1, %p795_p4 }
  0x68   : > { %v308_v22 = vmax.f32 %v306_v19, %v307_v21 }
  0x69   : > { %v354_v54 = vrot.slane %v353_v48, 2  ;;  %v361_v56 = vrot.slane %v360_v51, 2 }
  0x6a   : > { %v311_v24 = vcombine.low %v301_v20, %v308_v22 }
  0x6b   : > { %v355_v57 = vadd.f32 %v354_v54, %v353_v48  ;;  %v362_v58 = vadd.f32 %v361_v56, %v360_v51 }
  0x6c   : > { %v313_v25 = vsub.f32 %v289_v3, %v311_v24 }
  0x6d   : > { %v356_v59 = vrot.slane %v355_v57, 1  ;;  %v363_v60 = vrot.slane %v362_v58, 1 }
  0x6e   : > { %v314_v26 = vmul.f32 1.442695, %v313_v25  ;;  %v429_v19 = vld [vmem:[#allocation3] sm:$0x3] }
  0x6f   : > { %v357_v2 = vadd.f32 %v356_v59, %v355_v57  ;;  %v364_v7 = vadd.f32 %v363_v60, %v362_v58  ;;  %v438_v21 = vrot.slane %v429_v19, %v1119_v28 }
  0x70   : > { %726 = vpow2.f32 %v314_v26 }
  0x71   : > { %v442_v4 = vsel %vm416_vm5, %v438_v21, 0.0 }
  0x7a   : > { %v727_v32 = vpop.eup %726 }
  0x7b   : > { %v317_v33 = vcombine.high %v727_v32, %v727_v32  ;;  %v319_v34 = vsel %vm294_vm1, %v727_v32, 0.0 }
  0x7c   : > { %v320_v36 = vrot.slane %v319_v34, 4 }
  0x7d   : > { %v326_v38 = vsel %vm294_vm1, %v317_v33, 0.0 }
  0x7e   : > { %v321_v39 = vadd.f32 %v320_v36, %v319_v34  ;;  %v327_v40 = vrot.slane %v326_v38, 4 }
  0x80   : > { %v322_v43 = vrot.slane %v321_v39, 2  ;;  %v328_v44 = vadd.f32 %v327_v40, %v326_v38 }
  0x82   : > { %v323_v46 = vadd.f32 %v322_v43, %v321_v39  ;;  %v329_v47 = vrot.slane %v328_v44, 2 }
  0x84   : > { %v324_v49 = vrot.slane %v323_v46, 1  ;;  %v330_v50 = vadd.f32 %v329_v47, %v328_v44 }
  0x86   : > { %v325_v52 = vadd.f32 %v324_v49, %v323_v46  ;;  %v331_v53 = vrot.slane %v330_v50, 1 }
  0x88   : > { %v332_v55 = vadd.f32 %v331_v53, %v330_v50  ;;  %728 = vlog2.f32 %v325_v52 }
  0x8a   : > { %730 = vlog2.f32 %v332_v55 }
  0x92   : > { %v729_v63 = vpop.eup %728 }
  0x93   : > { %v334_v0 = vmul.f32 0.6931472, %v729_v63 }
  0x94   : > { %v731_v3 = vpop.eup %730 }
  0x95   : > { %v336_v5 = vmul.f32 0.6931472, %v731_v3  ;;  %v337_v6 = vadd.f32 %v334_v0, %v301_v20  ;;  %v434_v20 = vrot.slane %v429_v19, %v1117_v27 }
  0x97   : > { %v338_v9 = vadd.f32 %v336_v5, %v308_v22  ;;  %v366_v10 = vsub.f32 %v337_v6, %v357_v2  ;;  %v441_v29 = vsel %vm416_vm5, %v434_v20, 0.0 }
  0x98   : > { %v443_v31 = vadd.f32 %v442_v4, %v441_v29 }
  0x99   : > { %v367_v11 = vsub.f32 %v338_v9, %v364_v7 }
  0x9b   : > { %v370_v13 = vcombine.low %v366_v10, %v367_v11 }
  0x9d   : > { %v377_v14 = vrot.slane %v370_v13, %v376_v12 }
  0x9f   : > { %v384_v15 = vrot.slane %v377_v14, %v376_v12 }
  0xa1   : > { %v386_v17 = vsel %vm365_vm2, %v384_v15, 0.0 }
  0xa2   : > { %v392_v18 = vadd.f32 %v391_v16, %v386_v17 }
  0xa4   : > { %397 = vst.msk [vmem:[#allocation2] sm:$0x3] %vm1100_vm0, %v392_v18 }
  0xab   : > { %v404_v22 = vld [vmem:[#allocation2] sm:$0x3] }
  0xac   : > { %v409_v23 = vrot.slane %v404_v22, %v1117_v27  ;;  %v413_v24 = vrot.slane %v404_v22, %v1119_v28 }
  0xae   : > { %v417_v25 = vsel %vm416_vm5, %v409_v23, 0.0  ;;  %v418_v26 = vsel %vm416_vm5, %v413_v24, 0.0 }
  0xaf   : > { %v419_v30 = vadd.f32 %v418_v26, %v417_v25 }
  0xb1   : > { %420 = vadd.xlane.f32.xlu0 %v419_v30 }
  0xb5   : > { %444 = vadd.xlane.f32.xlu0 %v443_v31 }
 0x13e   : > { %v421_v1 = vpop.xlane.xlu0 %420 }
 0x13f   : > { %v422_v32 = vrot.slane %v421_v1, 4 }
 0x141   : > { %v423_v33 = vadd.f32 %v422_v32, %v421_v1 }
 0x142   : > { %v445_v34 = vpop.xlane.xlu0 %444 }
 0x143   : > { %v424_v35 = vrot.slane %v423_v33, 2  ;;  %v446_v27 = vrot.slane %v445_v34, 4 }
 0x145   : > { %v447_v28 = vadd.f32 %v446_v27, %v445_v34  ;;  %v425_v36 = vadd.f32 %v424_v35, %v423_v33 }
 0x147   : > { %v448_v37 = vrot.slane %v447_v28, 2  ;;  %v426_v38 = vrot.slane %v425_v36, 1 }
 0x149   : > { %v449_v39 = vadd.f32 %v448_v37, %v447_v28  ;;  %v427_v40 = vadd.f32 %v426_v38, %v425_v36 }
 0x14b   : > { %647 = vpush %v427_v40  ;;  %v450_v41 = vrot.slane %v449_v39, 1 }
 0x14d   : > { %v451_v42 = vadd.f32 %v450_v41, %v449_v39 }
 0x14f   : > { %649 = vpush %v451_v42 }
 0x17c   : > { %s648_s19 = spop %647 }
 0x17d   : > { %v453_v43 = vstv %s648_s19 }
 0x17e   : > { %454 = vst [vmem:[%s264_s29] sm:$0x1] %v453_v43 }
 0x17f   : > { %805 = shalt.err (!%p802_p2)
}
 0x180   : > { %s806_s7 = scalar_lea.hbm %s1147_s11, 16  ;;  %s810_s18 = scalar_lea.hbm %s1231_s2, 32 }
 0x181   : > { %p807_p9 = scmp.ne.s32.totalorder %s1147_s11, %s806_s7  ;;  %p811_p6 = scmp.lt.u32.totalorder %s1147_s11, %s1231_s2 }
 0x182   : > { %p812_p13 = scmp.lt.u32.totalorder %s810_s18, %s806_s7  ;;  %p814_p8 = scmp.lt.u32.totalorder %s806_s7, %s1147_s11 }
 0x183   : > { %p808_p11 = pnand %p807_p9, %p1247_p0 }
 0x184   : > { %p813_p5 = por %p812_p13, %p811_p6 }
 0x185   : > { %p809_p3 = pneg %p808_p11 }
 0x186   : > { %p815_p7 = por %p814_p8, %p813_p5 }
 0x188   : > { %p816_p4 = pnand %p815_p7, %p809_p3 }
 0x18a   : > { %819 = shalt.err (!%p816_p4)
}
 0x18b   : > { %655 = dma.vmem_to_hbm [thread:$0]  (%p1247_p0), %s1149_s6, 16, %s1147_s11, %s458_s21  }
 0x18c   : > { %s650_s8 = spop %649  ;;  %s1180_s9 = scalar_lea.hbm %s1232_s3, %s641_s24 }
 0x18d   : > { %v455_v44 = vstv %s650_s8  ;;  %s462_s7 = scalar_lea.sflag [#allocation11], %s1086_s23  ;;  %s820_s22 = scalar_lea.vmem %s1151_s5, 16 }
 0x18e   : > { %456 = vst [vmem:[%s270_s4] sm:$0x1] %v455_v44  ;;  %p821_p10 = scmp.ne.s32.totalorder %s1151_s5, %s820_s22  ;;  %s917_s29 = smov [#allocation10]  }
 0x18f   : > { %s824_s18 = sshll.u32 %s917_s29, 4  ;;  %s825_s18 = int_to_ptr.vmem [resolvable:$false] %s824_s18 }
 0x190   : > { %p822_p12 = pnand %p821_p10, %p1247_p0  ;;  %s826_s6 = scalar_lea.vmem %s825_s18, 32 }
 0x191   : > { %p827_p2 = scmp.lt.s32.totalorder %s1151_s5, %s825_s18  ;;  %p828_p9 = scmp.lt.s32.totalorder %s826_s6, %s820_s22 }
 0x192   : > { %p823_p1 = pneg %p822_p12 }
 0x193   : > { %p829_p11 = por %p828_p9, %p827_p2 }
 0x195   : > { %p830_p3 = pnand %p829_p11, %p823_p1 }
 0x197   : > { %833 = shalt.err (!%p830_p3)
}
 0x198   : > { %s834_s15 = scalar_lea.hbm %s1180_s9, 16  ;;  %s838_s4 = scalar_lea.hbm %s1232_s3, 32 }
 0x199   : > { %p835_p6 = scmp.ne.s32.totalorder %s1180_s9, %s834_s15  ;;  %p839_p8 = scmp.lt.u32.totalorder %s1180_s9, %s1232_s3 }
 0x19a   : > { %p840_p7 = scmp.lt.u32.totalorder %s838_s4, %s834_s15  ;;  %p842_p10 = scmp.lt.u32.totalorder %s834_s15, %s1180_s9 }
 0x19b   : > { %p836_p13 = pnand %p835_p6, %p1247_p0 }
 0x19c   : > { %p841_p4 = por %p840_p7, %p839_p8 }
 0x19d   : > { %p837_p5 = pneg %p836_p13 }
 0x19e   : > { %p843_p12 = por %p842_p10, %p841_p4 }
 0x1a0   : > { %p844_p1 = pnand %p843_p12, %p837_p5 }
 0x1a2   : > { %847 = shalt.err (!%p844_p1)
}
 0x1a3   : > { %656 = dma.vmem_to_hbm [thread:$0]  (%p1247_p0), %s1151_s5, 16, %s1180_s9, %s462_s7  }
 0x1a4 PF: > { %s501_s28 = sand.u32 1, %s890_s12   ;;  %p1248_p2 = scmp.ne.s32.totalorder %s1238_s27, 0 }
 0x1a5   : > { %p1249_p9 = scmp.ge.s32.totalorder %s910_s17, 2  ;;  %s502_s19 = scalar_lea.sflag [#allocation6], %s501_s28 }
 0x1a7   : > { %p667_p11 = pnand %p1249_p9, %p1248_p2 }
 0x1a9   : > { %881 = dma.done.wait (!%p667_p11), %s502_s19, 16  }
 0x1aa   : > { %883 = vsyncadd (!%p667_p11), %s502_s19, 4294967280  ;;  %s510_s8 = scalar_lea.sflag [#allocation11], %s501_s28 }
 0x1ab   : > { %885 = dma.done.wait (!%p667_p11), %s510_s8, 16  }
 0x1ac   : > { %887 = vsyncadd (!%p667_p11), %s510_s8, 4294967280  ;;  %s26_s17 = sadd.s32 1, %s910_s17   ;;  %s1250_s12 = smov %s894_s13 }
 0x1ad   : > { %p23_p3 = scmp.ge.s32.totalorder %s26_s17, 4   ;;  %s1251_s13 = smov %s898_s14 }
 0x1ae   : > { %s1252_s14 = smov %s994_s26  ;;  %s1253_s15 = smov %s906_s16 }
 0x1af   : > { %s1254_s16 = smov %s1256_s20  ;;  %25 = sbr.rel (!%p23_p3) target bundleno = 10 (0xa), region = 111 }
 0x1b6   :  { %514 = vsyncpa [#allocation5], 1 }
 0x1b7   :  { %516 = vsyncpa [#allocation5 + $0x1], 1 }
 0x1b8   :  { %517 = vsyncpa [#allocation8], 1 }
 0x1b9   :  { %519 = vsyncpa [#allocation8 + $0x1], 1 }
 0x1ba   :  { %520 = vsyncpa [#allocation6], 1 }
 0x1bb   :  { %522 = vsyncpa [#allocation6 + $0x1], 1 }
 0x1bc   :  { %523 = vsyncpa [#allocation11], 1 }
 0x1bd   :  { %525 = vsyncpa [#allocation11 + $0x1], 1 }

</bundles_post_ra>
